<compile_context>
chip_gen: v7x
topology: tpu7x:2x2x1
jax: 0.10.0
libtpu: 0.0.40
codegen_flags: <defaults>
</compile_context>

<pallas_src>
import jax
import jax.numpy as jnp
from jax import lax
from jax.experimental import pallas as pl
from jax.experimental.pallas import tpu as pltpu


# ----------------------------------------------------------------------------
# Fused kernels
# ----------------------------------------------------------------------------
def _graphconv_norm_kernel(x_ref, w_ref, adj_ref, o_ref):
    x = x_ref[...]
    w = w_ref[...]
    adj = adj_ref[...].astype(jnp.float32)
    n = adj.shape[0]

    # XW = X @ W  (MXU, f32 accumulation); never leaves VMEM.
    xw = jnp.dot(x, w, preferred_element_type=jnp.float32)                  # (N, F)

    # S = adj^T @ XW with the transpose folded into the contraction
    # (contract adj axis 0 against XW axis 0) -- no XLU transpose of adj.
    dn = (((0,), (0,)), ((), ()))
    s = lax.dot_general(adj, xw, dn, preferred_element_type=jnp.float32)    # (N, F)

    # colsum(adj) as a column vector via a tiny MXU matvec (transpose folded too).
    ones_col = jnp.ones((n, 1), jnp.float32)
    colsum = lax.dot_general(adj, ones_col, dn,
                             preferred_element_type=jnp.float32)            # (N, 1)

    # diag(adj) as a column vector (mask + lane-axis reduction).
    row = lax.broadcasted_iota(jnp.int32, (n, n), 0)
    col = lax.broadcasted_iota(jnp.int32, (n, n), 1)
    diag_mask = (row == col).astype(jnp.float32)
    adj_diag = jnp.sum(adj * diag_mask, axis=1, keepdims=True)              # (N, 1)

    corr = 1.0 - adj_diag                                                   # (N, 1)
    deg = colsum + corr                                                     # >= 1 always
    # deg >= 1 by construction, so PyTorch's inf->0 guard is dead code; exact divide
    # keeps bit-level parity with f32 reference math.
    out = (s + corr * xw) / deg
    o_ref[...] = out.astype(o_ref.dtype)


def _graphconv_plain_kernel(x_ref, w_ref, adj_ref, o_ref):
    xw = jnp.dot(x_ref[...], w_ref[...], preferred_element_type=jnp.float32)
    out = jnp.dot(adj_ref[...].astype(jnp.float32), xw,
                  preferred_element_type=jnp.float32)
    o_ref[...] = out.astype(o_ref.dtype)


# ----------------------------------------------------------------------------
# Wrapper
# ----------------------------------------------------------------------------
def graph_conv_forward(X, adj, W, adj_norm):
    N, K = X.shape
    K2, F = W.shape
    assert K == K2, "weight/in_features mismatch"
    assert adj.shape == (N, N), "adjacency must be (num_nodes, num_nodes)"

    normalize = (adj_norm == "true")
    kernel = _graphconv_norm_kernel if normalize else _graphconv_plain_kernel

    # Whole-problem-in-VMEM plan (appropriate for small graphs / this test harness).
    # TODO(synk): add a row/contraction-tiled variant (grid over node tiles with an
    # f32 VMEM accumulator, reduction axis last + "arbitrary") for adjacencies that
    # do not fit VMEM (v7x cap is 64 MiB).
    est_bytes = 4 * (2 * (N * K + K * F + N * N + N * F)      # double-buffered I/O
                     + 3 * N * N + 2 * N * F + 8 * N)         # in-kernel intermediates
    vmem_cap = 64 * 2 ** 20                                   # safe across v5e/v6e/v7x
    if est_bytes > vmem_cap:
        raise ValueError(
            f"GraphConv fused kernel needs ~{est_bytes / 2**20:.1f} MiB VMEM "
            f"(> {vmem_cap / 2**20:.0f} MiB); a tiled variant is required.")

    compiler_kwargs = {"dimension_semantics": ("arbitrary",)}
    if est_bytes > 16 * 2 ** 20:     # raise v5e's 16 MiB default scoped-VMEM limit
        compiler_kwargs["vmem_limit_bytes"] = vmem_cap

    flops = 2 * N * K * F + 2 * N * N * F + (2 * N * N if normalize else 0)
    bytes_accessed = 4 * (N * K + K * F + N * N + N * F)
    cost = pl.CostEstimate(flops=flops, transcendentals=0,
                           bytes_accessed=bytes_accessed)

    return pl.pallas_call(
        kernel,
        out_shape=jax.ShapeDtypeStruct((N, F), jnp.float32),
        grid=(1,),
        in_specs=[
            pl.BlockSpec((N, K), lambda i: (0, 0)),
            pl.BlockSpec((K, F), lambda i: (0, 0)),
            pl.BlockSpec((N, N), lambda i: (0, 0)),
        ],
        out_specs=pl.BlockSpec((N, F), lambda i: (0, 0)),
        compiler_params=pltpu.CompilerParams(**compiler_kwargs),
        cost_estimate=cost,
    )(X, W, adj)


class GraphConvPallas:
    def __init__(self, in_channels, out_channels, norm, key):
        self.in_channels = in_channels
        self.out_channels = out_channels
        self.adj_norm = norm
        # xavier_uniform_ for weight, zeros_ for bias
        # (bias is unused in forward, matching the PyTorch module).
        bound = (6.0 / (in_channels + out_channels)) ** 0.5
        self.weight = jax.random.uniform(
            key, (in_channels, out_channels), jnp.float32, -bound, bound)
        self.bias = jnp.zeros((out_channels,), jnp.float32)

    def __call__(self, X, adj, norm_arg=None):
        return graph_conv_forward(X, adj, self.weight, self.adj_norm)


# ----------------------------------------------------------------------------
# Reference (plain JAX, literal transcription of the PyTorch math)
# ----------------------------------------------------------------------------
def reference_forward(X, adj, W, adj_norm):
    XW = X @ W
    if adj_norm == "true":
        n = adj.shape[0]
        eye = jnp.eye(n, dtype=jnp.float32)
        H = adj.T
        H = H * (eye == 0).astype(jnp.float32) + eye
        deg = jnp.sum(H, axis=1)
        deg_inv = 1.0 / deg
        deg_inv = jnp.where(jnp.isinf(deg_inv), 0.0, deg_inv)
        H = jnp.diag(deg_inv) @ H
        H = H.T          # end of norm()
        H = H.T          # forward applies .t() again
    else:
        H = adj
    return H @ XW


if __name__ == "__main__":
    key = jax.random.PRNGKey(0)
    k_w, k_x, k_adj, k_w2, k_x2, k_adj2 = jax.random.split(key, 6)

    # Primary test: lane-dense shapes (feature axis = 128 lanes, N multiple of 8).
    num_nodes, in_channels, out_channels = 128, 128, 128
    layer = GraphConvPallas(in_channels, out_channels, norm="true", key=k_w)

    X = jax.random.normal(k_x, (num_nodes, in_channels), jnp.float32)
    adj = (jax.random.uniform(k_adj, (num_nodes, num_nodes)) < 0.1).astype(jnp.float32)
    adj = adj * (1.0 - jnp.eye(num_nodes, dtype=jnp.float32))   # no self loops

    out = jax.block_until_ready(layer(X, adj))
    ref = reference_forward(X, adj, layer.weight, "true")
    assert out.shape == (num_nodes, out_channels)
    assert jnp.allclose(out, ref, atol=1e-4, rtol=1e-4), "norm=true mismatch"

    # norm == 'false' path.
    layer_f = GraphConvPallas(in_channels, out_channels, norm="false", key=k_w)
    out_f = jax.block_until_ready(layer_f(X, adj))
    ref_f = reference_forward(X, adj, layer_f.weight, "false")
    assert jnp.allclose(out_f, ref_f, atol=1e-4, rtol=1e-4), "norm=false mismatch"

    # Small, non-lane-aligned shapes still work (full-array blocks are always legal).
    n2, ci2, co2 = 16, 32, 32
    layer_s = GraphConvPallas(ci2, co2, norm="true", key=k_w2)
    X2 = jax.random.normal(k_x2, (n2, ci2), jnp.float32)
    adj2 = (jax.random.uniform(k_adj2, (n2, n2)) < 0.3).astype(jnp.float32)
    adj2 = adj2 * (1.0 - jnp.eye(n2, dtype=jnp.float32))
    out_s = jax.block_until_ready(layer_s(X2, adj2))
    ref_s = reference_forward(X2, adj2, layer_s.weight, "true")
    assert jnp.allclose(out_s, ref_s, atol=1e-4, rtol=1e-4), "small-shape mismatch"

    print("KERNEL_OK")
</pallas_src>

<mosaic_0001>
module attributes {stable_mosaic.version = 11 : i64} {
  func.func @_graphconv_norm_kernel(%arg0: i32, %arg1: memref<128x128xf32, #tpu.memory_space<vmem>>, %arg2: memref<128x128xf32, #tpu.memory_space<vmem>>, %arg3: memref<128x128xf32, #tpu.memory_space<vmem>>, %arg4: memref<128x128xf32, #tpu.memory_space<vmem>>) attributes {dimension_semantics = [#tpu.dimension_semantics<arbitrary>], iteration_bounds = array<i64: 1>, scalar_prefetch = 0 : i64, scratch_operands = 0 : i64, tpu.core_type = #tpu.core_type<tc>, window_params = [{pipeline_mode = #tpu.pipeline_mode<synchronous>, transform_indices = @transform_0, window_bounds = array<i64: 128, 128>}, {pipeline_mode = #tpu.pipeline_mode<synchronous>, transform_indices = @transform_1, window_bounds = array<i64: 128, 128>}, {pipeline_mode = #tpu.pipeline_mode<synchronous>, transform_indices = @transform_2, window_bounds = array<i64: 128, 128>}, {pipeline_mode = #tpu.pipeline_mode<synchronous>, transform_indices = @transform_3, window_bounds = array<i64: 128, 128>}]} {
    %c0 = arith.constant 0 : index
    %c0_0 = arith.constant 0 : index
    %0 = vector.load %arg1[%c0, %c0_0] : memref<128x128xf32, #tpu.memory_space<vmem>>, vector<128x128xf32>
    %c0_1 = arith.constant 0 : index
    %c0_2 = arith.constant 0 : index
    %1 = vector.load %arg2[%c0_1, %c0_2] : memref<128x128xf32, #tpu.memory_space<vmem>>, vector<128x128xf32>
    %c0_3 = arith.constant 0 : index
    %c0_4 = arith.constant 0 : index
    %2 = vector.load %arg3[%c0_3, %c0_4] : memref<128x128xf32, #tpu.memory_space<vmem>>, vector<128x128xf32>
    %cst = arith.constant dense<0.000000e+00> : vector<128x128xf32>
    %3 = tpu.matmul %0, %1, %cst {dimension_numbers = #tpu.dot_dimension_numbers<[1], [0], [0], [1], [0, 0, 1, 1], [], []>} : vector<128x128xf32>, vector<128x128xf32>, vector<128x128xf32> -> vector<128x128xf32>
    %cst_5 = arith.constant dense<0.000000e+00> : vector<128x128xf32>
    %4 = tpu.matmul %2, %3, %cst_5 {dimension_numbers = #tpu.dot_dimension_numbers<[0], [0], [1], [1], [0, 1, 1, 1], [], []>} : vector<128x128xf32>, vector<128x128xf32>, vector<128x128xf32> -> vector<128x128xf32>
    %cst_6 = arith.constant 1.000000e+00 : f32
    %5 = vector.broadcast %cst_6 : f32 to vector<128x1xf32>
    %cst_7 = arith.constant dense<0.000000e+00> : vector<128x1xf32>
    %6 = tpu.matmul %2, %5, %cst_7 {dimension_numbers = #tpu.dot_dimension_numbers<[0], [0], [1], [1], [0, 1, 1, 1], [], []>} : vector<128x128xf32>, vector<128x1xf32>, vector<128x1xf32> -> vector<128x1xf32>
    %7 = tpu.iota {dimensions = array<i32: 0>} : vector<128x128xi32>
    %8 = tpu.iota {dimensions = array<i32: 1>} : vector<128x128xi32>
    %9 = arith.cmpi eq, %7, %8 : vector<128x128xi32>
    %10 = arith.extui %9 : vector<128x128xi1> to vector<128x128xi32>
    %11 = arith.sitofp %10 : vector<128x128xi32> to vector<128x128xf32>
    %12 = arith.mulf %2, %11 : vector<128x128xf32>
    %cst_8 = arith.constant dense<0.000000e+00> : vector<128xf32>
    %13 = vector.multi_reduction <add>, %12, %cst_8 [1] : vector<128x128xf32> to vector<128xf32>
    %14 = vector.shape_cast %13 : vector<128xf32> to vector<128x1xf32>
    %cst_9 = arith.constant 1.000000e+00 : f32
    %15 = vector.broadcast %cst_9 : f32 to vector<128x1xf32>
    %16 = arith.subf %15, %14 : vector<128x1xf32>
    %17 = arith.addf %6, %16 : vector<128x1xf32>
    %18 = vector.broadcast %16 : vector<128x1xf32> to vector<128x128xf32>
    %19 = arith.mulf %18, %3 : vector<128x128xf32>
    %20 = arith.addf %4, %19 : vector<128x128xf32>
    %21 = vector.broadcast %17 : vector<128x1xf32> to vector<128x128xf32>
    %22 = arith.divf %20, %21 : vector<128x128xf32>
    %c0_10 = arith.constant 0 : index
    %c0_11 = arith.constant 0 : index
    %23 = vector.load %arg4[%c0_10, %c0_11] : memref<128x128xf32, #tpu.memory_space<vmem>>, vector<128x128xf32>
    tpu.vector_store %arg4[%c0_10, %c0_11], %22 {strides = array<i32>} : memref<128x128xf32, #tpu.memory_space<vmem>>, vector<128x128xf32>,
    return
  }
  func.func @transform_0(%arg0: i32) -> (i32, i32) {
    %c0_i32 = arith.constant 0 : i32
    %c0_i32_0 = arith.constant 0 : i32
    %c0_i32_1 = arith.constant 0 : i32
    return %c0_i32, %c0_i32_0 : i32, i32
  }
  func.func @transform_1(%arg0: i32) -> (i32, i32) {
    %c0_i32 = arith.constant 0 : i32
    %c0_i32_0 = arith.constant 0 : i32
    %c0_i32_1 = arith.constant 0 : i32
    return %c0_i32, %c0_i32_0 : i32, i32
  }
  func.func @transform_2(%arg0: i32) -> (i32, i32) {
    %c0_i32 = arith.constant 0 : i32
    %c0_i32_0 = arith.constant 0 : i32
    %c0_i32_1 = arith.constant 0 : i32
    return %c0_i32, %c0_i32_0 : i32, i32
  }
  func.func @transform_3(%arg0: i32) -> (i32, i32) {
    %c0_i32 = arith.constant 0 : i32
    %c0_i32_0 = arith.constant 0 : i32
    %c0_i32_1 = arith.constant 0 : i32
    return %c0_i32, %c0_i32_0 : i32, i32
  }
}

</mosaic_0001>

<bundles_post_ra>
// kernel: tpu_custom_call.1
= control target key start
LH: loop header
LB: loop body
LE: loop exit
PB: predicated region body
PF: predicated region fallthrough
CT: control target
= control target key end

     0   :  { %8 = vsyncpa [#allocation3], 0  ;;  %s1769_s0 = inlined_call_operand.hbm [shape: f32[128,128], index: 0, kind: input, shape index: {}]   ;;  %s1770_s1 = inlined_call_operand.hbm [shape: f32[128,128], index: 1, kind: input, shape index: {}]   ;;  %s1771_s2 = inlined_call_operand.hbm [shape: f32[128,128], index: 2, kind: input, shape index: {}]   ;;  %s1772_s3 = inlined_call_operand.hbm [shape: f32[128,128], index: 3, kind: output, shape index: {}]  }
   0x1   :  { %9 = vsyncpa [#allocation6], 0 }
   0x2   :  { %10 = vsyncpa [#allocation4], 0  ;;  %s1377_s12 = smov [#allocation5]   ;;  %s1378_s14 = smov [#allocation2]  }
   0x3   :  { %s28_s13 = sshll.u32 %s1377_s12, 4  ;;  %s16_s15 = sshll.u32 %s1378_s14, 4  ;;  %s29_s13 = int_to_ptr.vmem [resolvable:$true] %s28_s13  ;;  %s1406_s15 = int_to_ptr.vmem [resolvable:$true] %s16_s15 }
   0x4   :  { %s1283_s18 = scalar_lea.hbm %s1770_s1, 2048 }
   0x5   :  { %p1284_p0 = scmp.ne.s32.totalorder %s1770_s1, %s1283_s18  ;;  %p1287_p1 = scmp.lt.u32.totalorder %s1283_s18, %s1770_s1 }
   0x7   :  { %p1289_p2 = pnand %p1287_p1, %p1284_p0 }
   0x9   :  { %1292 = shalt.err (!%p1289_p2)
}
   0xa   :  { %s1293_s23 = scalar_lea.vmem %s29_s13, 2048  ;;  %p1298_p4 = scmp.lt.s32.totalorder %s29_s13, %s29_s13 }
   0xb   :  { %p1294_p3 = scmp.ne.s32.totalorder %s29_s13, %s1293_s23  ;;  %p1299_p5 = scmp.lt.s32.totalorder %s1293_s23, %s1293_s23 }
   0xd   :  { %p1300_p6 = por %p1299_p5, %p1298_p4 }
   0xf   :  { %p1301_p7 = pnand %p1300_p6, %p1294_p3 }
  0x11   :  { %1304 = shalt.err (!%p1301_p7)
}
  0x12   :  { %s1379_s24 = smov 128   ;;  %s1380_s25 = smov 8  }
  0x13   :  { %34 = dma.hbm_to_vmem [thread:$0]  %s1770_s1, 2048, %s29_s13, [#allocation6], %s1379_s24, %s1379_s24, %s1380_s25  }
  0x14   :  { %s1305_s30 = scalar_lea.hbm %s1769_s0, 2048 }
  0x15   :  { %p1306_p8 = scmp.ne.s32.totalorder %s1769_s0, %s1305_s30  ;;  %p1309_p9 = scmp.lt.u32.totalorder %s1305_s30, %s1769_s0 }
  0x17   :  { %p1311_p10 = pnand %p1309_p9, %p1306_p8 }
  0x19   :  { %1314 = shalt.err (!%p1311_p10)
}
  0x1a   :  { %s1315_s8 = scalar_lea.vmem %s1406_s15, 2048  ;;  %p1320_p12 = scmp.lt.s32.totalorder %s1406_s15, %s1406_s15 }
  0x1b   :  { %p1316_p11 = scmp.ne.s32.totalorder %s1406_s15, %s1315_s8  ;;  %p1321_p13 = scmp.lt.s32.totalorder %s1315_s8, %s1315_s8 }
  0x1d   :  { %p1322_p0 = por %p1321_p13, %p1320_p12 }
  0x1f   :  { %p1323_p1 = pnand %p1322_p0, %p1316_p11 }
  0x21   :  { %1326 = shalt.err (!%p1323_p1)
}
  0x22   :  { %22 = dma.hbm_to_vmem [thread:$0]  %s1769_s0, 2048, %s1406_s15, [#allocation3], %s1379_s24, %s1379_s24, %s1380_s25  }
  0x23   :  { %s1381_s10 = smov [#allocation7]   ;;  %s1327_s14 = scalar_lea.hbm %s1771_s2, 2048 }
  0x24   :  { %s40_s11 = sshll.u32 %s1381_s10, 4  ;;  %p1328_p2 = scmp.ne.s32.totalorder %s1771_s2, %s1327_s14  ;;  %s41_s11 = int_to_ptr.vmem [resolvable:$true] %s40_s11 }
  0x25   :  { %p1331_p3 = scmp.lt.u32.totalorder %s1327_s14, %s1771_s2 }
  0x27   :  { %p1333_p4 = pnand %p1331_p3, %p1328_p2 }
  0x29   :  { %1336 = shalt.err (!%p1333_p4)
}
  0x2a   :  { %s1337_s20 = scalar_lea.vmem %s41_s11, 2048  ;;  %p1342_p6 = scmp.lt.s32.totalorder %s41_s11, %s41_s11 }
  0x2b   :  { %p1338_p5 = scmp.ne.s32.totalorder %s41_s11, %s1337_s20  ;;  %p1343_p7 = scmp.lt.s32.totalorder %s1337_s20, %s1337_s20 }
  0x2d   :  { %p1344_p8 = por %p1343_p7, %p1342_p6 }
  0x2f   :  { %p1345_p9 = pnand %p1344_p8, %p1338_p5 }
  0x31   :  { %1348 = shalt.err (!%p1345_p9)
}
  0x32   :  { %46 = dma.hbm_to_vmem [thread:$0]  %s1771_s2, 2048, %s41_s11, [#allocation6], %s1379_s24, %s1379_s24, %s1380_s25  }
  0x33   :  { %1371 = dma.done.wait [#allocation3], 2048  }
  0x34   :  { %1372 = vsyncadd [#allocation3], 4294965248 }
  0x35   :  { %1373 = dma.done.wait [#allocation6], 4096  }
  0x36   :  { %1374 = vsyncadd [#allocation6], 4294963200  ;;  %v249_v0 = vlaneseq  ;;  %v1382_v1 = vmov 1.0|1.0   ;;  %v1383_v6 = vmov 0.0   ;;  %v88_v8 = vld [vmem:[#allocation7] sm:$0xff] }
  0x37   :  { %1176 = vmatprep.subr.bf16.mxu1 %v1382_v1  ;;  %v72_v9 = vld [vmem:[#allocation5] sm:$0xff]  ;;  %v73_v10 = vld [vmem:[#allocation5 + $0x8] sm:$0xff]  ;;  %380 = vxpose.xlu0.b32.start [1/16] %v88_v8, 128  ;;  %v74_v13 = vld [vmem:[#allocation5 + $0x10] sm:$0xff]  ;;  %s1385_s2 = smov [#allocation8]  }
  0x38   :  { %1177 = vmatpush3.bf16.msra.mxu1 %v1382_v1  ;;  %v1460_v2 = vshrl.u32 %v249_v0, 7  ;;  %v1462_v3 = vand.u32 127, %v249_v0  ;;  %v1144_v12 = vpack.c.bf16 %v73_v10, %v72_v9  ;;  %v75_v14 = vld [vmem:[#allocation5 + $0x18] sm:$0xff]  ;;  %v89_v17 = vld [vmem:[#allocation7 + $0x8] sm:$0xff]  ;;  %v76_v19 = vld [vmem:[#allocation5 + $0x20] sm:$0xff]  ;;  %s851_s21 = sshll.u32 %s1385_s2, 4  ;;  %s852_s21 = int_to_ptr.vmem [resolvable:$true] %s851_s21 }
  0x39   :  { %1178 = vmatprep.subr.bf16.mxu1 %v1382_v1  ;;  %v1148_v18 = vpack.c.bf16 %v75_v14, %v74_v13  ;;  %v77_v20 = vld [vmem:[#allocation5 + $0x28] sm:$0xff]  ;;  %v90_v25 = vld [vmem:[#allocation7 + $0x10] sm:$0xff]  ;;  %v79_v27 = vld [vmem:[#allocation5 + $0x38] sm:$0xff]  ;;  %s1349_s22 = scalar_lea.vmem %s852_s21, 2048  ;;  %p1354_p11 = scmp.lt.s32.totalorder %s852_s21, %s852_s21 }
  0x3a   :  { %vm268_vm0 = vcmp.eq.s32.totalorder %v1460_v2, %v1462_v3  ;;  %v251_v4 = vadd.s32 8, %v1460_v2  ;;  %v252_v5 = vadd.s32 16, %v1460_v2  ;;  %v253_v16 = vadd.s32 24, %v1460_v2  ;;  %1145 = vmatprep.subr.bf16.mxu0 %v1144_v12  ;;  %v78_v26 = vld [vmem:[#allocation5 + $0x30] sm:$0xff]  ;;  %v56_v29 = vld [vmem:[#allocation2] sm:$0xff]  ;;  %v91_v33 = vld [vmem:[#allocation7 + $0x18] sm:$0xff]  ;;  %p1350_p10 = scmp.ne.s32.totalorder %s852_s21, %s1349_s22  ;;  %p1355_p12 = scmp.lt.s32.totalorder %s1349_s22, %s1349_s22 }
  0x3b   :  { %v864_v7 = vsel %vm268_vm0, 1.0, %v1383_v6  ;;  %1147 = vmatpush3.bf16.msra.mxu0 %v1144_v12  ;;  %381 = vxpose.xlu0.b32.cont [2/16] %v89_v17, 128  ;;  %v1152_v23 = vpack.c.bf16 %v77_v20, %v76_v19  ;;  %v254_v24 = vadd.s32 32, %v1460_v2  ;;  %v1156_v31 = vpack.c.bf16 %v79_v27, %v78_v26  ;;  %v80_v34 = vld [vmem:[#allocation5 + $0x40] sm:$0xff]  ;;  %v81_v35 = vld [vmem:[#allocation5 + $0x48] sm:$0xff]  ;;  %v82_v41 = vld [vmem:[#allocation5 + $0x50] sm:$0xff] }
  0x3c   :  { %1179 = vmatpush3.bf16.msra.mxu1 %v1382_v1  ;;  %vm269_vm1 = vcmp.eq.s32.totalorder %v251_v4, %v1462_v3  ;;  %v316_v15 = vmul.f32 %v864_v7, %v88_v8  ;;  %vm270_vm2 = vcmp.eq.s32.totalorder %v252_v5, %v1462_v3  ;;  %1149 = vmatprep.subr.bf16.mxu0 %v1148_v18  ;;  %v255_v32 = vadd.s32 40, %v1460_v2  ;;  %v92_v40 = vld [vmem:[#allocation7 + $0x20] sm:$0xff]  ;;  %v83_v42 = vld [vmem:[#allocation5 + $0x58] sm:$0xff]  ;;  %v93_v47 = vld [vmem:[#allocation7 + $0x28] sm:$0xff]  ;;  %p1356_p13 = por %p1355_p12, %p1354_p11 }
  0x3d   :  { %v865_v11 = vsel %vm269_vm1, 1.0, %v1383_v6  ;;  %1180 = vmatprep.subr.bf16.mxu1 %v1382_v1  ;;  %v866_v22 = vsel %vm270_vm2, 1.0, %v1383_v6  ;;  %vm271_vm3 = vcmp.eq.s32.totalorder %v253_v16, %v1462_v3  ;;  %vm272_vm4 = vcmp.eq.s32.totalorder %v254_v24, %v1462_v3  ;;  %1008 = vmatprep.mubr.f32.mxu0 %v56_v29  ;;  %v84_v48 = vld [vmem:[#allocation5 + $0x60] sm:$0xff]  ;;  %v85_v49 = vld [vmem:[#allocation5 + $0x68] sm:$0xff]  ;;  %v94_v54 = vld [vmem:[#allocation7 + $0x30] sm:$0xff] }
  0x3e   :  { %332 = vadd.xlane.f32.xlu1 %v316_v15  ;;  %v317_v21 = vmul.f32 %v865_v11, %v89_v17  ;;  %v318_v28 = vmul.f32 %v866_v22, %v90_v25  ;;  %v867_v30 = vsel %vm271_vm3, 1.0, %v1383_v6  ;;  %v868_v37 = vsel %vm272_vm4, 1.0, %v1383_v6  ;;  %v86_v55 = vld [vmem:[#allocation5 + $0x70] sm:$0xff]  ;;  %v87_v56 = vld [vmem:[#allocation5 + $0x78] sm:$0xff]  ;;  %v57_v5 = vld [vmem:[#allocation2 + $0x8] sm:$0xff]  ;;  %p1357_p0 = pnand %p1356_p13, %p1350_p10 }
  0x3f   :  { %1151 = vmatpush3.bf16.msra.mxu0 %v1148_v18  ;;  %382 = vxpose.xlu0.b32.cont [3/16] %v90_v25, 128  ;;  %v319_v36 = vmul.f32 %v867_v30, %v91_v33  ;;  %v1160_v38 = vpack.c.bf16 %v81_v35, %v80_v34  ;;  %vm273_vm5 = vcmp.eq.s32.totalorder %v255_v32, %v1462_v3  ;;  %v256_v39 = vadd.s32 48, %v1460_v2  ;;  %v95_v61 = vld [vmem:[#allocation7 + $0x38] sm:$0xff]  ;;  %v58_v8 = vld [vmem:[#allocation2 + $0x10] sm:$0xff]  ;;  %v97_v10 = vld [vmem:[#allocation7 + $0x48] sm:$0xff] }
  0x40   :  { %1181 = vmatpush3.bf16.msra.mxu1 %v1382_v1  ;;  %1153 = vmatprep.subr.bf16.mxu0 %v1152_v23  ;;  %v320_v43 = vmul.f32 %v868_v37, %v92_v40  ;;  %v869_v44 = vsel %vm273_vm5, 1.0, %v1383_v6  ;;  %v1164_v45 = vpack.c.bf16 %v83_v42, %v82_v41  ;;  %v257_v46 = vadd.s32 56, %v1460_v2  ;;  %v59_v12 = vld [vmem:[#allocation2 + $0x18] sm:$0xff]  ;;  %v60_v14 = vld [vmem:[#allocation2 + $0x20] sm:$0xff]  ;;  %v98_v16 = vld [vmem:[#allocation7 + $0x50] sm:$0xff] }
  0x41   :  { %1182 = vmatprep.subr.bf16.mxu1 %v1382_v1  ;;  %vm274_vm6 = vcmp.eq.s32.totalorder %v256_v39, %v1462_v3  ;;  %v321_v50 = vmul.f32 %v869_v44, %v93_v47  ;;  %v1168_v52 = vpack.c.bf16 %v85_v49, %v84_v48  ;;  %v258_v53 = vadd.s32 64, %v1460_v2  ;;  %v61_v18 = vld [vmem:[#allocation2 + $0x28] sm:$0xff]  ;;  %v62_v20 = vld [vmem:[#allocation2 + $0x30] sm:$0xff]  ;;  %v99_v22 = vld [vmem:[#allocation7 + $0x58] sm:$0xff] }
  0x42   :  { %334 = vadd.xlane.f32.xlu1 %v317_v21  ;;  %v870_v51 = vsel %vm274_vm6, 1.0, %v1383_v6  ;;  %vm275_vm7 = vcmp.eq.s32.totalorder %v257_v46, %v1462_v3  ;;  %v1172_v59 = vpack.c.bf16 %v87_v56, %v86_v55  ;;  %v259_v60 = vadd.s32 72, %v1460_v2  ;;  %v63_v24 = vld [vmem:[#allocation2 + $0x38] sm:$0xff]  ;;  %v64_v26 = vld [vmem:[#allocation2 + $0x40] sm:$0xff]  ;;  %v65_v30 = vld [vmem:[#allocation2 + $0x48] sm:$0xff] }
  0x43   :  { %1155 = vmatpush3.bf16.msra.mxu0 %v1152_v23  ;;  %383 = vxpose.xlu0.b32.cont [4/16] %v91_v33, 128  ;;  %v322_v57 = vmul.f32 %v870_v51, %v94_v54  ;;  %v871_v58 = vsel %vm275_vm7, 1.0, %v1383_v6  ;;  %vm276_vm8 = vcmp.eq.s32.totalorder %v258_v53, %v1462_v3  ;;  %v260_v0 = vadd.s32 80, %v1460_v2  ;;  %v66_v32 = vld [vmem:[#allocation2 + $0x50] sm:$0xff]  ;;  %v101_v34 = vld [vmem:[#allocation7 + $0x68] sm:$0xff] }
  0x44   :  { %1183 = vmatpush3.bf16.msra.mxu1 %v1382_v1  ;;  %1157 = vmatprep.subr.bf16.mxu0 %v1156_v31  ;;  %v323_v62 = vmul.f32 %v871_v58, %v95_v61  ;;  %v872_v63 = vsel %vm276_vm8, 1.0, %v1383_v6  ;;  %vm277_vm9 = vcmp.eq.s32.totalorder %v259_v60, %v1462_v3  ;;  %v261_v9 = vadd.s32 88, %v1460_v2  ;;  %v102_v39 = vld [vmem:[#allocation7 + $0x70] sm:$0xff]  ;;  %v69_v41 = vld [vmem:[#allocation2 + $0x68] sm:$0xff] }
  0x45   :  { %1184 = vmatprep.subr.bf16.mxu1 %v1382_v1  ;;  %v873_v7 = vsel %vm277_vm9, 1.0, %v1383_v6  ;;  %vm278_vm10 = vcmp.eq.s32.totalorder %v260_v0, %v1462_v3  ;;  %v262_v15 = vadd.s32 96, %v1460_v2  ;;  %v263_v21 = vadd.s32 104, %v1460_v2  ;;  %v70_v42 = vld [vmem:[#allocation2 + $0x70] sm:$0xff] }
  0x46   :  { %336 = vadd.xlane.f32.xlu1 %v318_v28  ;;  %v325_v11 = vmul.f32 %v873_v7, %v97_v10  ;;  %v874_v13 = vsel %vm278_vm10, 1.0, %v1383_v6  ;;  %vm279_vm11 = vcmp.eq.s32.totalorder %v261_v9, %v1462_v3  ;;  %v264_v27 = vadd.s32 112, %v1460_v2  ;;  %v100_v28 = vld [vmem:[#allocation7 + $0x60] sm:$0xff] }
  0x47   :  { %1159 = vmatpush3.bf16.msra.mxu0 %v1156_v31  ;;  %384 = vxpose.xlu0.b32.cont [5/16] %v92_v40, 128  ;;  %v326_v17 = vmul.f32 %v874_v13, %v98_v16  ;;  %v875_v19 = vsel %vm279_vm11, 1.0, %v1383_v6  ;;  %vm280_vm12 = vcmp.eq.s32.totalorder %v262_v15, %v1462_v3  ;;  %vm281_vm13 = vcmp.eq.s32.totalorder %v263_v21, %v1462_v3 }
  0x48   :  { %1185 = vmatpush3.bf16.msra.mxu1 %v1382_v1  ;;  %1161 = vmatprep.subr.bf16.mxu0 %v1160_v38  ;;  %v327_v23 = vmul.f32 %v875_v19, %v99_v22  ;;  %v876_v25 = vsel %vm280_vm12, 1.0, %v1383_v6  ;;  %v877_v31 = vsel %vm281_vm13, 1.0, %v1383_v6  ;;  %vm282_vm14 = vcmp.eq.s32.totalorder %v264_v27, %v1462_v3 }
  0x49   :  { %1186 = vmatprep.subr.bf16.mxu1 %v1382_v1  ;;  %v328_v29 = vmul.f32 %v876_v25, %v100_v28  ;;  %v265_v33 = vadd.s32 120, %v1460_v2  ;;  %v329_v35 = vmul.f32 %v877_v31, %v101_v34  ;;  %v878_v37 = vsel %vm282_vm14, 1.0, %v1383_v6 }
  0x4a   :  { %338 = vadd.xlane.f32.xlu1 %v319_v36  ;;  %v67_v36 = vld [vmem:[#allocation2 + $0x58] sm:$0xff]  ;;  %v330_v40 = vmul.f32 %v878_v37, %v102_v39  ;;  %v1384_v60 = vmov 0  }
  0x4b   :  { %1163 = vmatpush3.bf16.msra.mxu0 %v1160_v38  ;;  %385 = vxpose.xlu0.b32.cont [6/16] %v93_v47, 128  ;;  %v68_v38 = vld [vmem:[#allocation2 + $0x60] sm:$0xff]  ;;  %vm283_vm15 = vcmp.eq.s32.totalorder %v265_v33, %v1462_v3 }
  0x4c   :  { %1187 = vmatpush3.bf16.msra.mxu1 %v1382_v1  ;;  %1165 = vmatprep.subr.bf16.mxu0 %v1164_v45  ;;  %v879_v2 = vsel %vm283_vm15, 1.0, %v1383_v6 }
  0x4d   :  { %1188 = vmatprep.subr.bf16.mxu1 %v1382_v1  ;;  %1249 = vset.pattern.permute.xlu1 %v1384_v60 }
  0x4e   :  { %340 = vadd.xlane.f32.xlu1 %v320_v43  ;;  %v103_v43 = vld [vmem:[#allocation7 + $0x78] sm:$0xff] }
  0x4f   :  { %1167 = vmatpush3.bf16.msra.mxu0 %v1164_v45  ;;  %386 = vxpose.xlu0.b32.cont [7/16] %v94_v54, 128  ;;  %v331_v44 = vmul.f32 %v879_v2, %v103_v43  ;;  %v71_v45 = vld [vmem:[#allocation2 + $0x78] sm:$0xff] }
  0x50   :  { %1189 = vmatpush3.bf16.msra.mxu1 %v1382_v1  ;;  %1169 = vmatprep.subr.bf16.mxu0 %v1168_v52 }
  0x51   :  { %1190 = vmatprep.subr.bf16.mxu1 %v1382_v1 }
  0x52   :  { %342 = vadd.xlane.f32.xlu1 %v321_v50 }
  0x53   :  { %1171 = vmatpush3.bf16.msra.mxu0 %v1168_v52  ;;  %387 = vxpose.xlu0.b32.cont [8/16] %v95_v61, 128 }
  0x54   :  { %1191 = vmatpush3.bf16.msra.mxu1 %v1382_v1  ;;  %1173 = vmatprep.subr.bf16.mxu0 %v1172_v59  ;;  %v96_v1 = vld [vmem:[#allocation7 + $0x40] sm:$0xff] }
  0x55   :  { %v324_v4 = vmul.f32 %v872_v63, %v96_v1 }
  0x56   :  { %344 = vadd.xlane.f32.xlu1 %v322_v57 }
  0x57   :  { %1175 = vmatpush3.bf16.msra.mxu0 %v1172_v59  ;;  %388 = vxpose.xlu0.b32.cont [9/16] %v96_v1, 128 }
  0x5a   :  { %346 = vadd.xlane.f32.xlu1 %v323_v62  ;;  %1009 = vmatmul.mubr.f32.vlgmr.msra.gmra.mrb[0].mxu0 %v57_v5 }
  0x5b   :  { %1011 = vmatprep.mubr.f32.mxu0 %v58_v8  ;;  %389 = vxpose.xlu0.b32.cont [10/16] %v97_v10, 128 }
  0x5e   :  { %348 = vadd.xlane.f32.xlu1 %v324_v4  ;;  %1012 = vmatmul.mubr.f32.gmra.mrb[2].mxu0 %v59_v12 }
  0x5f   :  { %1014 = vmatprep.mubr.f32.mxu0 %v60_v14  ;;  %390 = vxpose.xlu0.b32.cont [11/16] %v98_v16, 128 }
  0x62   :  { %350 = vadd.xlane.f32.xlu1 %v325_v11  ;;  %1015 = vmatmul.mubr.f32.gmra.mrb[4].mxu0 %v61_v18 }
  0x63   :  { %1017 = vmatprep.mubr.f32.mxu0 %v62_v20  ;;  %391 = vxpose.xlu0.b32.cont [12/16] %v99_v22, 128 }
  0x66   :  { %352 = vadd.xlane.f32.xlu1 %v326_v17  ;;  %1018 = vmatmul.mubr.f32.gmra.mrb[6].mxu0 %v63_v24 }
  0x67   :  { %1020 = vmatprep.mubr.f32.mxu0 %v64_v26  ;;  %392 = vxpose.xlu0.b32.cont [13/16] %v100_v28, 128 }
  0x6a   :  { %354 = vadd.xlane.f32.xlu1 %v327_v23  ;;  %1021 = vmatmul.mubr.f32.gmra.mrb[8].mxu0 %v65_v30 }
  0x6b   :  { %1023 = vmatprep.mubr.f32.mxu0 %v66_v32  ;;  %393 = vxpose.xlu0.b32.cont [14/16] %v101_v34, 128 }
  0x6e   :  { %356 = vadd.xlane.f32.xlu1 %v328_v29  ;;  %1024 = vmatmul.mubr.f32.gmra.mrb[10].mxu0 %v67_v36 }
  0x6f   :  { %1026 = vmatprep.mubr.f32.mxu0 %v68_v38  ;;  %394 = vxpose.xlu0.b32.cont [15/16] %v102_v39, 128 }
  0x72   :  { %358 = vadd.xlane.f32.xlu1 %v329_v35  ;;  %1027 = vmatmul.mubr.f32.gmra.mrb[12].mxu0 %v69_v41 }
  0x73   :  { %1029 = vmatprep.mubr.f32.mxu0 %v70_v42  ;;  %395 = vxpose.xlu0.b32.end [16/16] %v103_v43, 128 }
  0x76   :  { %360 = vadd.xlane.f32.xlu1 %v330_v40  ;;  %1030 = vmatmul.mubr.f32.gmra.mrb[14].mxu0 %v71_v45 }
  0x7a   :  { %362 = vadd.xlane.f32.xlu1 %v331_v44 }
  0x9c   :  { %1250 = vset.pattern.permute.xlu0 %v1384_v60 }
  0xb7   :  { %v396_v3 = vpop.trf.xlu0 }
  0xb8   :  { %1064 = vmatprep.mubr.f32.mxu1 %v396_v3  ;;  %1120 = vmatprep.mubr.f32.mxu0 %v396_v3 }
  0xbb   :  { %v1526_v46 = vpop.trf.xlu0 }
  0xbc   :  { %1065 = vmatmul.mubr.f32.vlgmr.msra.gmra.mrb[0].mxu1 %v1526_v46 }
  0xbf   :  { %v1529_v47 = vpop.trf.xlu0 }
  0xc0   :  { %1067 = vmatprep.mubr.f32.mxu1 %v1529_v47 }
  0xc3   :  { %v1532_v6 = vpop.trf.xlu0 }
  0xc4   :  { %1068 = vmatmul.mubr.f32.gmra.mrb[2].mxu1 %v1532_v6 }
  0xc7   :  { %v1535_v48 = vpop.trf.xlu0 }
  0xc8   :  { %1070 = vmatprep.mubr.f32.mxu1 %v1535_v48 }
  0xcb   :  { %v1538_v49 = vpop.trf.xlu0  ;;  %v1630_v24 = vpop.xlane.xlu1 %332 }
  0xcc   :  { %1071 = vmatmul.mubr.f32.gmra.mrb[4].mxu1 %v1538_v49  ;;  %v364_v32 = vsub.f32 1.0, %v1630_v24 }
  0xcf   :  { %v1541_v50 = vpop.trf.xlu0  ;;  %v1632_v25 = vpop.xlane.xlu1 %334 }
  0xd0   :  { %1073 = vmatprep.mubr.f32.mxu1 %v1541_v50  ;;  %v365_v31 = vsub.f32 1.0, %v1632_v25 }
  0xd3   :  { %v1544_v51 = vpop.trf.xlu0  ;;  %v1634_v26 = vpop.xlane.xlu1 %336 }
  0xd4   :  { %1074 = vmatmul.mubr.f32.gmra.mrb[6].mxu1 %v1544_v51  ;;  %v366_v42 = vsub.f32 1.0, %v1634_v26 }
  0xd7   :  { %v404_v52 = vpop.trf.xlu0  ;;  %v1636_v27 = vpop.xlane.xlu1 %338 }
  0xd8   :  { %1076 = vmatprep.mubr.f32.mxu1 %v404_v52  ;;  %v367_v38 = vsub.f32 1.0, %v1636_v27 }
  0xdb   :  { %v1547_v53 = vpop.trf.xlu0  ;;  %v1638_v28 = vpop.xlane.xlu1 %340 }
  0xdc   :  { %1077 = vmatmul.mubr.f32.gmra.mrb[8].mxu1 %v1547_v53 }
  0xdf   :  { %v1550_v54 = vpop.trf.xlu0  ;;  %v1640_v29 = vpop.xlane.xlu1 %342 }
  0xe0   :  { %1079 = vmatprep.mubr.f32.mxu1 %v1550_v54  ;;  %v369_v44 = vsub.f32 1.0, %v1640_v29 }
  0xe3   :  { %v1553_v55 = vpop.trf.xlu0  ;;  %v1642_v30 = vpop.xlane.xlu1 %344 }
  0xe4   :  { %1080 = vmatmul.mubr.f32.gmra.mrb[10].mxu1 %v1553_v55 }
  0xe7   :  { %v1556_v56 = vpop.trf.xlu0  ;;  %v1650_v37 = vpop.xlane.xlu1 %346 }
  0xe8   :  { %1082 = vmatprep.mubr.f32.mxu1 %v1556_v56 }
  0xeb   :  { %v1559_v57 = vpop.trf.xlu0  ;;  %v1655_v2 = vpop.xlane.xlu1 %348 }
  0xec   :  { %1083 = vmatmul.mubr.f32.gmra.mrb[12].mxu1 %v1559_v57 }
  0xef   :  { %v1562_v58 = vpop.trf.xlu0  ;;  %v1661_v45 = vpop.xlane.xlu1 %350 }
  0xf0   :  { %1085 = vmatprep.mubr.f32.mxu1 %v1562_v58 }
  0xf3   :  { %v1565_v59 = vpop.trf.xlu0 }
  0xf4   :  { %1086 = vmatmul.mubr.f32.gmra.mrb[14].mxu1 %v1565_v59 }
  0xf5   :  { %1132 = vmatprep.mubr.f32.mxu1 %v404_v52 }
 0x12d   :  { %v1568_v61 = vpop.f32.mrb[0].mxu0 }
 0x12e   :  { %v1570_v62 = vpop.f32.mrb[1].mxu0 }
 0x12f   :  { %v1192_v63 = vpack.c.bf16 %v1568_v61, %v1570_v62 }
 0x131   :  { %v1574_v0 = vpop.f32.mrb[2].mxu0  ;;  %1193 = vmatprep.subr.bf16.mxu0 %v1192_v63  ;;  %1224 = vmatprep.subr.bf16.mxu1 %v1192_v63 }
 0x132   :  { %v1576_v1 = vpop.f32.mrb[3].mxu0  ;;  %1195 = vmatpush3.bf16.msra.mxu0 %v1192_v63  ;;  %1232 = vmatpush3.bf16.msra.mxu1 %v1192_v63 }
 0x133   :  { %v1196_v4 = vpack.c.bf16 %v1574_v0, %v1576_v1 }
 0x135   :  { %v1580_v5 = vpop.f32.mrb[4].mxu0  ;;  %1197 = vmatprep.subr.bf16.mxu0 %v1196_v4  ;;  %1225 = vmatprep.subr.bf16.mxu1 %v1196_v4 }
 0x136   :  { %v1582_v7 = vpop.f32.mrb[5].mxu0  ;;  %1199 = vmatpush3.bf16.msra.mxu0 %v1196_v4  ;;  %1233 = vmatpush3.bf16.msra.mxu1 %v1196_v4 }
 0x137   :  { %v1200_v8 = vpack.c.bf16 %v1580_v5, %v1582_v7 }
 0x139   :  { %v1586_v9 = vpop.f32.mrb[6].mxu0  ;;  %1201 = vmatprep.subr.bf16.mxu0 %v1200_v8  ;;  %1226 = vmatprep.subr.bf16.mxu1 %v1200_v8 }
 0x13a   :  { %v1588_v10 = vpop.f32.mrb[7].mxu0  ;;  %1203 = vmatpush3.bf16.msra.mxu0 %v1200_v8  ;;  %1234 = vmatpush3.bf16.msra.mxu1 %v1200_v8 }
 0x13b   :  { %v1204_v11 = vpack.c.bf16 %v1586_v9, %v1588_v10 }
 0x13d   :  { %v1592_v12 = vpop.f32.mrb[8].mxu0  ;;  %1205 = vmatprep.subr.bf16.mxu0 %v1204_v11  ;;  %1227 = vmatprep.subr.bf16.mxu1 %v1204_v11 }
 0x13e   :  { %v1594_v13 = vpop.f32.mrb[9].mxu0  ;;  %1207 = vmatpush3.bf16.msra.mxu0 %v1204_v11  ;;  %1235 = vmatpush3.bf16.msra.mxu1 %v1204_v11 }
 0x13f   :  { %v1208_v14 = vpack.c.bf16 %v1592_v12, %v1594_v13 }
 0x141   :  { %v1598_v15 = vpop.f32.mrb[10].mxu0  ;;  %1209 = vmatprep.subr.bf16.mxu0 %v1208_v14  ;;  %1228 = vmatprep.subr.bf16.mxu1 %v1208_v14 }
 0x142   :  { %v1600_v16 = vpop.f32.mrb[11].mxu0  ;;  %1211 = vmatpush3.bf16.msra.mxu0 %v1208_v14  ;;  %1236 = vmatpush3.bf16.msra.mxu1 %v1208_v14 }
 0x143   :  { %v1212_v17 = vpack.c.bf16 %v1598_v15, %v1600_v16 }
 0x145   :  { %v1604_v18 = vpop.f32.mrb[12].mxu0  ;;  %1213 = vmatprep.subr.bf16.mxu0 %v1212_v17  ;;  %1229 = vmatprep.subr.bf16.mxu1 %v1212_v17 }
 0x146   :  { %v1606_v19 = vpop.f32.mrb[13].mxu0  ;;  %1215 = vmatpush3.bf16.msra.mxu0 %v1212_v17  ;;  %1237 = vmatpush3.bf16.msra.mxu1 %v1212_v17 }
 0x147   :  { %v1216_v20 = vpack.c.bf16 %v1604_v18, %v1606_v19 }
 0x149   :  { %v1610_v21 = vpop.f32.mrb[14].mxu0  ;;  %1217 = vmatprep.subr.bf16.mxu0 %v1216_v20  ;;  %1230 = vmatprep.subr.bf16.mxu1 %v1216_v20 }
 0x14a   :  { %v1612_v22 = vpop.f32.mrb[15].mxu0  ;;  %1219 = vmatpush3.bf16.msra.mxu0 %v1216_v20  ;;  %1238 = vmatpush3.bf16.msra.mxu1 %v1216_v20 }
 0x14b   :  { %v1220_v23 = vpack.c.bf16 %v1610_v21, %v1612_v22 }
 0x14d   :  { %1221 = vmatprep.subr.bf16.mxu0 %v1220_v23  ;;  %1231 = vmatprep.subr.bf16.mxu1 %v1220_v23 }
 0x14e   :  { %1223 = vmatpush3.bf16.msra.mxu0 %v1220_v23  ;;  %1239 = vmatpush3.bf16.msra.mxu1 %v1220_v23 }
 0x151   :  { %1121 = vmatmul.mubr.f32.vlgmr.msra.gmra.mrb[16].mxu0 %v1526_v46  ;;  %1133 = vmatmul.mubr.f32.vlgmr.msra.gmra.mrb[16].mxu1 %v1547_v53 }
 0x152   :  { %1123 = vmatprep.mubr.f32.mxu0 %v1529_v47  ;;  %1135 = vmatprep.mubr.f32.mxu1 %v1550_v54  ;;  %v370_v54 = vsub.f32 1.0, %v1642_v30 }
 0x155   :  { %1124 = vmatmul.mubr.f32.gmra.mrb[18].mxu0 %v1532_v6  ;;  %1136 = vmatmul.mubr.f32.gmra.mrb[18].mxu1 %v1553_v55  ;;  %v368_v6 = vsub.f32 1.0, %v1638_v28 }
 0x156   :  { %1126 = vmatprep.mubr.f32.mxu0 %v1535_v48  ;;  %1138 = vmatprep.mubr.f32.mxu1 %v1556_v56 }
 0x159   :  { %1127 = vmatmul.mubr.f32.gmra.mrb[20].mxu0 %v1538_v49  ;;  %1139 = vmatmul.mubr.f32.gmra.mrb[20].mxu1 %v1559_v57  ;;  %v1668_v49 = vpop.xlane.xlu1 %352  ;;  %v373_v57 = vsub.f32 1.0, %v1661_v45 }
 0x15a   :  { %1129 = vmatprep.mubr.f32.mxu0 %v1541_v50  ;;  %1141 = vmatprep.mubr.f32.mxu1 %v1562_v58  ;;  %v371_v50 = vsub.f32 1.0, %v1650_v37  ;;  %v372_v58 = vsub.f32 1.0, %v1655_v2  ;;  %v374_v14 = vsub.f32 1.0, %v1668_v49 }
 0x15d   :  { %1130 = vmatmul.mubr.f32.gmra.mrb[22].mxu0 %v1544_v51  ;;  %1142 = vmatmul.mubr.f32.gmra.mrb[22].mxu1 %v1565_v59  ;;  %v1674_v55 = vpop.xlane.xlu1 %354 }
 0x15e   :  { %v375_v11 = vsub.f32 1.0, %v1674_v55 }
 0x160   :  { %v568_v24 = vmul.f32 %v1598_v15, %v375_v11 }
 0x161   :  { %v1680_v4 = vpop.xlane.xlu1 %356 }
 0x165   :  { %v1684_v17 = vpop.xlane.xlu1 %358 }
 0x18f   :  { %v1066_v33 = vpop.f32.mrb[0].mxu1 }
 0x190   :  { %v484_v34 = vadd.f32 %v1066_v33, %v365_v31  ;;  %v478_v35 = vpop.f32.mrb[1].mxu1 }
 0x191   :  { %v479_v36 = vadd.f32 %v478_v35, %v364_v32  ;;  %v1686_v35 = vpop.xlane.xlu1 %360 }
 0x192   :  { %725 = vperm.xlu1 %1249, %v484_v34  }
 0x193   :  { %720 = vperm.xlu0 %1250, %v479_v36   ;;  %v377_v36 = vsub.f32 1.0, %v1684_v17 }
 0x195   :  { %v1694_v45 = vpop.xlane.xlu1 %362 }
 0x197   :  { %v1069_v39 = vpop.f32.mrb[2].mxu1 }
 0x198   :  { %v494_v40 = vadd.f32 %v1069_v39, %v367_v38  ;;  %v488_v41 = vpop.f32.mrb[3].mxu1  ;;  %v376_v39 = vsub.f32 1.0, %v1680_v4  ;;  %v563_v4 = vmul.f32 %v370_v54, %v1588_v10 }
 0x199   :  { %v489_v43 = vadd.f32 %v488_v41, %v366_v42 }
 0x19a   :  { %735 = vperm.xlu1 %1249, %v494_v40  }
 0x19e   :  { %730 = vperm.xlu1 %1249, %v489_v43  }
 0x19f   :  { %v1072_v3 = vpop.f32.mrb[4].mxu1 }
 0x1a0   :  { %v504_v46 = vadd.f32 %v1072_v3, %v369_v44  ;;  %v498_v47 = vpop.f32.mrb[5].mxu1  ;;  %v379_v3 = vsub.f32 1.0, %v1694_v45 }
 0x1a1   :  { %v499_v48 = vadd.f32 %v498_v47, %v368_v6 }
 0x1a2   :  { %745 = vperm.xlu1 %1249, %v504_v46   ;;  %v378_v46 = vsub.f32 1.0, %v1686_v35 }
 0x1a6   :  { %740 = vperm.xlu1 %1249, %v499_v48  }
 0x1a7   :  { %v1075_v51 = vpop.f32.mrb[6].mxu1 }
 0x1a8   :  { %v514_v52 = vadd.f32 %v1075_v51, %v371_v50  ;;  %v508_v53 = vpop.f32.mrb[7].mxu1 }
 0x1a9   :  { %v509_v56 = vadd.f32 %v508_v53, %v370_v54 }
 0x1aa   :  { %755 = vperm.xlu1 %1249, %v514_v52  }
 0x1ae   :  { %750 = vperm.xlu1 %1249, %v509_v56  }
 0x1af   :  { %v1078_v59 = vpop.f32.mrb[8].mxu1 }
 0x1b0   :  { %v524_v60 = vadd.f32 %v1078_v59, %v373_v57  ;;  %v518_v63 = vpop.f32.mrb[9].mxu1 }
 0x1b1   :  { %v519_v8 = vadd.f32 %v518_v63, %v372_v58  ;;  %v566_v63 = vmul.f32 %v1592_v12, %v373_v57 }
 0x1b2   :  { %765 = vperm.xlu1 %1249, %v524_v60   ;;  %v558_v60 = vmul.f32 %v1568_v61, %v365_v31 }
 0x1b3   :  { %760 = vperm.xlu0 %1250, %v519_v8   ;;  %v557_v8 = vmul.f32 %v364_v32, %v1570_v62  ;;  %v560_v62 = vmul.f32 %v1574_v0, %v367_v38 }
 0x1b7   :  { %v1081_v20 = vpop.f32.mrb[10].mxu1 }
 0x1b8   :  { %v534_v23 = vadd.f32 %v1081_v20, %v375_v11  ;;  %v528_v33 = vpop.f32.mrb[11].mxu1 }
 0x1b9   :  { %v529_v34 = vadd.f32 %v528_v33, %v374_v14  ;;  %v565_v33 = vmul.f32 %v372_v58, %v1594_v13  ;;  %v559_v58 = vmul.f32 %v366_v42, %v1576_v1  ;;  %v562_v1 = vmul.f32 %v1580_v5, %v369_v44 }
 0x1ba   :  { %775 = vperm.xlu1 %1249, %v534_v23  }
 0x1bb   :  { %770 = vperm.xlu0 %1250, %v529_v34  }
 0x1bf   :  { %v1084_v40 = vpop.f32.mrb[12].mxu1 }
 0x1c0   :  { %v544_v41 = vadd.f32 %v1084_v40, %v377_v36  ;;  %v538_v2 = vpop.f32.mrb[13].mxu1 }
 0x1c1   :  { %v539_v43 = vadd.f32 %v538_v2, %v376_v39 }
 0x1c2   :  { %785 = vperm.xlu1 %1249, %v544_v41  }
 0x1c3   :  { %780 = vperm.xlu0 %1250, %v539_v43  }
 0x1c7   :  { %v1087_v47 = vpop.f32.mrb[14].mxu1 }
 0x1c8   :  { %v554_v48 = vadd.f32 %v1087_v47, %v379_v3  ;;  %v548_v49 = vpop.f32.mrb[15].mxu1 }
 0x1c9   :  { %v549_v51 = vadd.f32 %v548_v49, %v378_v46 }
 0x1ca   :  { %795 = vperm.xlu1 %1249, %v554_v48   ;;  %v567_v48 = vmul.f32 %v374_v14, %v1600_v16  ;;  %v570_v16 = vmul.f32 %v1604_v18, %v377_v36 }
 0x1cb   :  { %790 = vperm.xlu0 %1250, %v549_v51  }
 0x211   :  { %v726_v52 = vpop.permute.xlu1 %725 }
 0x212   :  { %v721_v53 = vpop.permute.xlu0 %720  ;;  %1251 = vrcp.f32 %v726_v52 }
 0x213   :  { %1253 = vrcp.f32 %v721_v53 }
 0x219   :  { %v736_v55 = vpop.permute.xlu1 %735 }
 0x21a   :  { %1255 = vrcp.f32 %v736_v55 }
 0x21c   :  { %v1252_v43 = vpop.eup %1251 }
 0x21d   :  { %v731_v56 = vpop.permute.xlu1 %730  ;;  %v1254_v31 = vpop.eup %1253 }
 0x21e   :  { %1257 = vrcp.f32 %v731_v56  ;;  %v561_v56 = vmul.f32 %v368_v6, %v1582_v7  ;;  %v564_v7 = vmul.f32 %v1586_v9, %v371_v50 }
 0x221   :  { %v746_v59 = vpop.permute.xlu1 %745 }
 0x222   :  { %1259 = vrcp.f32 %v746_v59  ;;  %v569_v59 = vmul.f32 %v376_v39, %v1606_v19  ;;  %v572_v19 = vmul.f32 %v1610_v21, %v379_v3  ;;  %v571_v39 = vmul.f32 %v378_v46, %v1612_v22 }
 0x224   :  { %v1122_v20 = vpop.f32.mrb[16].mxu0  ;;  %v1134_v23 = vpop.f32.mrb[16].mxu1 }
 0x225   :  { %v645_v34 = vadd.f32 %v1122_v20, %v558_v60  ;;  %v1710_v40 = vadd.f32 %v1134_v23, %v566_v63  ;;  %v639_v41 = vpop.f32.mrb[17].mxu0  ;;  %v679_v2 = vpop.f32.mrb[17].mxu1 }
 0x226   :  { %v640_v47 = vadd.f32 %v639_v41, %v557_v8  ;;  %v1712_v25 = vadd.f32 %v679_v2, %v565_v33  ;;  %v741_v61 = vpop.permute.xlu1 %740  ;;  %v1256_v27 = vpop.eup %1255 }
 0x227   :  { %v801_v12 = vmul.f32 %v1252_v43, %v645_v34  ;;  %1261 = vrcp.f32 %v741_v61 }
 0x228   :  { %v799_v13 = vmul.f32 %v1254_v31, %v640_v47  ;;  %v1125_v32 = vpop.f32.mrb[18].mxu0  ;;  %v1137_v57 = vpop.f32.mrb[18].mxu1 }
 0x229   :  { %831 = vst [vmem:[#allocation8 + $0x8] sm:$0xff] %v801_v12  ;;  %v655_v49 = vadd.f32 %v1125_v32, %v560_v62  ;;  %v1722_v51 = vadd.f32 %v1137_v57, %v568_v24  ;;  %v649_v52 = vpop.f32.mrb[19].mxu0  ;;  %v689_v53 = vpop.f32.mrb[19].mxu1 }
 0x22a   :  { %830 = vst [vmem:[#allocation8] sm:$0xff] %v799_v13  ;;  %v650_v0 = vadd.f32 %v649_v52, %v559_v58  ;;  %v1724_v38 = vadd.f32 %v689_v53, %v567_v48  ;;  %v756_v15 = vpop.permute.xlu1 %755  ;;  %v1258_v11 = vpop.eup %1257 }
 0x22b   :  { %v805_v55 = vmul.f32 %v1256_v27, %v655_v49  ;;  %1263 = vrcp.f32 %v756_v15 }
 0x22c   :  { %v803_v26 = vmul.f32 %v1258_v11, %v650_v0  ;;  %v1128_v42 = vpop.f32.mrb[20].mxu0  ;;  %v1140_v14 = vpop.f32.mrb[20].mxu1 }
 0x22d   :  { %v1260_v60 = vpop.eup %1259  ;;  %833 = vst [vmem:[#allocation8 + $0x18] sm:$0xff] %v805_v55  ;;  %v665_v29 = vadd.f32 %v1128_v42, %v562_v1  ;;  %v705_v63 = vadd.f32 %v1140_v14, %v570_v16  ;;  %v659_v5 = vpop.f32.mrb[21].mxu0 }
 0x22e   :  { %v699_v44 = vpop.f32.mrb[21].mxu1  ;;  %832 = vst [vmem:[#allocation8 + $0x10] sm:$0xff] %v803_v26  ;;  %v660_v17 = vadd.f32 %v659_v5, %v561_v56  ;;  %v751_v36 = vpop.permute.xlu1 %750 }
 0x22f   :  { %v700_v18 = vadd.f32 %v699_v44, %v569_v59  ;;  %v809_v8 = vmul.f32 %v1260_v60, %v665_v29  ;;  %1265 = vrcp.f32 %v751_v36 }
 0x230   :  { %v1131_v28 = vpop.f32.mrb[22].mxu0  ;;  %v1143_v6 = vpop.f32.mrb[22].mxu1 }
 0x231   :  { %v1262_v20 = vpop.eup %1261  ;;  %835 = vst [vmem:[#allocation8 + $0x28] sm:$0xff] %v809_v8  ;;  %v675_v23 = vadd.f32 %v1131_v28, %v564_v7  ;;  %v715_v37 = vadd.f32 %v1143_v6, %v572_v19  ;;  %v669_v33 = vpop.f32.mrb[23].mxu0 }
 0x232   :  { %v709_v9 = vpop.f32.mrb[23].mxu1  ;;  %v807_v50 = vmul.f32 %v1262_v20, %v660_v17  ;;  %v670_v45 = vadd.f32 %v669_v33, %v563_v4  ;;  %v766_v21 = vpop.permute.xlu1 %765 }
 0x233   :  { %v710_v34 = vadd.f32 %v709_v9, %v571_v39  ;;  %1267 = vrcp.f32 %v766_v21  ;;  %v761_v3 = vpop.permute.xlu0 %760 }
 0x234   :  { %834 = vst [vmem:[#allocation8 + $0x20] sm:$0xff] %v807_v50  ;;  %1269 = vrcp.f32 %v761_v3 }
 0x235   :  { %v1264_v30 = vpop.eup %1263 }
 0x236   :  { %v813_v10 = vmul.f32 %v1264_v30, %v675_v23 }
 0x238   :  { %837 = vst [vmem:[#allocation8 + $0x38] sm:$0xff] %v813_v10 }
 0x239   :  { %v1266_v54 = vpop.eup %1265  ;;  %v776_v22 = vpop.permute.xlu1 %775 }
 0x23a   :  { %v811_v35 = vmul.f32 %v1266_v54, %v670_v45  ;;  %1271 = vrcp.f32 %v776_v22  ;;  %v771_v46 = vpop.permute.xlu0 %770 }
 0x23b   :  { %1273 = vrcp.f32 %v771_v46 }
 0x23c   :  { %836 = vst [vmem:[#allocation8 + $0x30] sm:$0xff] %v811_v35 }
 0x23d   :  { %v1268_v41 = vpop.eup %1267 }
 0x23e   :  { %v1270_v2 = vpop.eup %1269  ;;  %v817_v43 = vmul.f32 %v1268_v41, %v1710_v40 }
 0x23f   :  { %v815_v47 = vmul.f32 %v1270_v2, %v1712_v25 }
 0x240   :  { %839 = vst [vmem:[#allocation8 + $0x48] sm:$0xff] %v817_v43 }
 0x241   :  { %838 = vst [vmem:[#allocation8 + $0x40] sm:$0xff] %v815_v47  ;;  %v786_v61 = vpop.permute.xlu1 %785 }
 0x242   :  { %1275 = vrcp.f32 %v786_v61  ;;  %v781_v31 = vpop.permute.xlu0 %780 }
 0x243   :  { %1277 = vrcp.f32 %v781_v31 }
 0x244   :  { %v1272_v12 = vpop.eup %1271 }
 0x245   :  { %v1274_v62 = vpop.eup %1273  ;;  %v821_v24 = vmul.f32 %v1272_v12, %v1722_v51 }
 0x246   :  { %v819_v13 = vmul.f32 %v1274_v62, %v1724_v38 }
 0x247   :  { %841 = vst [vmem:[#allocation8 + $0x58] sm:$0xff] %v821_v24 }
 0x248   :  { %840 = vst [vmem:[#allocation8 + $0x50] sm:$0xff] %v819_v13 }
 0x249   :  { %v796_v32 = vpop.permute.xlu1 %795 }
 0x24a   :  { %1279 = vrcp.f32 %v796_v32  ;;  %v791_v57 = vpop.permute.xlu0 %790 }
 0x24b   :  { %1281 = vrcp.f32 %v791_v57 }
 0x24c   :  { %v1276_v40 = vpop.eup %1275 }
 0x24d   :  { %v1278_v25 = vpop.eup %1277  ;;  %v825_v58 = vmul.f32 %v1276_v40, %v705_v63 }
 0x24e   :  { %v823_v48 = vmul.f32 %v1278_v25, %v700_v18 }
 0x24f   :  { %843 = vst [vmem:[#allocation8 + $0x68] sm:$0xff] %v825_v58 }
 0x250   :  { %842 = vst [vmem:[#allocation8 + $0x60] sm:$0xff] %v823_v48 }
 0x254   :  { %v1280_v49 = vpop.eup %1279 }
 0x255   :  { %v1282_v52 = vpop.eup %1281  ;;  %v829_v53 = vmul.f32 %v1280_v49, %v715_v37 }
 0x256   :  { %v827_v51 = vmul.f32 %v1282_v52, %v710_v34 }
 0x257   :  { %845 = vst [vmem:[#allocation8 + $0x78] sm:$0xff] %v829_v53 }
 0x258   :  { %844 = vst [vmem:[#allocation8 + $0x70] sm:$0xff] %v827_v51 }
 0x259   :  { %1360 = shalt.err (!%p1357_p0)
}
 0x25a   :  { %s1361_s27 = scalar_lea.hbm %s1772_s3, 2048 }
 0x25b   :  { %p1362_p1 = scmp.ne.s32.totalorder %s1772_s3, %s1361_s27  ;;  %p1365_p2 = scmp.lt.u32.totalorder %s1361_s27, %s1772_s3 }
 0x25d   :  { %p1367_p3 = pnand %p1365_p2, %p1362_p1 }
 0x25f   :  { %1370 = shalt.err (!%p1367_p3)
}
 0x260   :  { %857 = dma.vmem_to_hbm [thread:$0]  %s852_s21, 2048, %s1772_s3, [#allocation4], %s1379_s24, %s1379_s24, %s1380_s25  }
 0x261   :  { %1375 = dma.done.wait [#allocation4], 2048  }
 0x262   :  { %1376 = vsyncadd [#allocation4], 4294965248 }
 0x263   :  { %861 = vsyncpa [#allocation3], 1 }
 0x264   :  { %862 = vsyncpa [#allocation6], 1 }
 0x265   :  { %863 = vsyncpa [#allocation4], 1 }

</bundles_post_ra>
